<compile_context>
chip_gen: v7x
topology: tpu7x:2x2x1
jax: 0.10.0
libtpu: 0.0.40
codegen_flags: <defaults>
</compile_context>

<pallas_src>
import dataclasses

import jax
import jax.numpy as jnp
from jax.experimental import pallas as pl
from jax.experimental.pallas import tpu as pltpu


def _round_up(x, m):
    return (x + m - 1) // m * m


def _vmem_budget_bytes():
    """~75% of physical VMEM (leaves compiler-internal scratch headroom)."""
    cap = 64 * 1024 * 1024  # conservative fallback (safe on every generation)
    try:
        cap = int(pltpu.get_tpu_info().vmem_capacity_bytes)
    except Exception:
        pass
    return (cap * 3) // 4


def mlp_kernel(x_ref, w1_ref, b1_ref, w2_ref, b2_ref, out_ref, acc_ref):
    k = pl.program_id(1)

    @pl.when(k == 0)
    def _init():
        # Fold b1 into the accumulator init (saves one VPU add per output tile).
        acc_ref[...] = jnp.broadcast_to(
            b1_ref[...].astype(jnp.float32), acc_ref.shape)

    # Layer 1 partial product for this K tile; x is cast per-tile on the VPU
    # (hides under the MXU), f32 accumulation.
    acc_ref[...] += jnp.dot(x_ref[...].astype(w1_ref.dtype), w1_ref[...],
                            preferred_element_type=jnp.float32)

    @pl.when(k == pl.num_programs(1) - 1)
    def _finalize():
        # ReLU (VPU), layer 2 with the VMEM-resident W2, add b2, store.
        h = jnp.maximum(acc_ref[...], 0.0)
        emb = jnp.dot(h.astype(w2_ref.dtype), w2_ref[...],
                      preferred_element_type=jnp.float32)
        emb = emb + b2_ref[...].astype(jnp.float32)
        out_ref[...] = emb.astype(out_ref.dtype)


@dataclasses.dataclass(frozen=True)
class MLPParams:
    w1: jax.Array          # (k_p, latent_p) compute_dtype
    b1: jax.Array          # (1, latent_p)   f32
    w2: jax.Array          # (latent_p, latent_p) compute_dtype
    b2: jax.Array          # (1, latent_p)   f32
    num_gene: int
    latent: int
    k_p: int
    latent_p: int
    tk: int
    tm_max: int
    compute_dtype: object
    vmem_budget: int


def prepare_mlp_params(w1, b1, w2, b2, *, compute_dtype=jnp.bfloat16,
                       tm_max=None, tk=None):
    """One-time weight preparation: pad to (8,128)-friendly shapes and cast to
    the MXU compute dtype.  Runs once at init, not per forward call."""
    num_gene, latent = w1.shape
    latent_p = _round_up(latent, 128)
    budget = _vmem_budget_bytes()

    # Generation-aware tile defaults: bigger tiles where more VMEM exists.
    if tm_max is None:
        tm_max = 2048 if budget >= 80 * 1024 * 1024 else 1024
    if tk is None:
        tk = 1024
    tk = _round_up(min(tk, _round_up(num_gene, 128)), 128)
    tm = tm_max

    cd = jnp.dtype(compute_dtype).itemsize

    def vmem_est(tm_, tk_):
        # Conservative: f32 x / f32 out, double-buffered residents (covers the
        # fallback path where pl.Buffered(1) is unavailable).
        return (2 * tm_ * tk_ * 4                 # x tiles (double-buffered)
                + 2 * tk_ * latent_p * cd         # W1 tiles (double-buffered)
                + 2 * tm_ * latent_p * 4          # out tiles (double-buffered)
                + 2 * latent_p * latent_p * cd    # W2
                + 4 * latent_p * 4                # b1, b2
                + tm_ * latent_p * 4)             # f32 accumulator

    while vmem_est(tm, tk) > budget:
        if tk > 512 and tk >= tm:
            tk = max(512, _round_up(tk // 2, 128))
        elif tm > 256:
            tm = max(256, _round_up(tm // 2, 8))
        elif tk > 128:
            tk = max(128, _round_up(tk // 2, 128))
        elif tm > 8:
            tm = max(8, _round_up(tm // 2, 8))
        else:
            break
    tm_max = tm

    k_p = _round_up(num_gene, tk)
    w1c = jnp.pad(w1, ((0, k_p - num_gene),
                       (0, latent_p - latent))).astype(compute_dtype)
    w2c = jnp.pad(w2, ((0, latent_p - latent),
                       (0, latent_p - latent))).astype(compute_dtype)
    b1p = jnp.pad(b1, (0, latent_p - latent)).astype(jnp.float32).reshape(1, latent_p)
    b2p = jnp.pad(b2, (0, latent_p - latent)).astype(jnp.float32).reshape(1, latent_p)

    return MLPParams(w1=w1c, b1=b1p, w2=w2c, b2=b2p, num_gene=num_gene,
                     latent=latent, k_p=k_p, latent_p=latent_p, tk=tk,
                     tm_max=tm_max, compute_dtype=compute_dtype,
                     vmem_budget=budget)


def mlp_forward(x, params: MLPParams, *, out_dtype=None):
    """x: (B, num_gene) in its original dtype. Returns (B, latent) in
    out_dtype (defaults to x.dtype; pass jnp.bfloat16 to halve writeback)."""
    B, num_gene = x.shape
    assert num_gene == params.num_gene
    out_dtype = x.dtype if out_dtype is None else out_dtype

    latent_p, k_p, tk = params.latent_p, params.k_p, params.tk
    tm = min(params.tm_max, _round_up(max(B, 8), 8))
    b_p = _round_up(B, tm)

    # Pad activations only when actually needed (no dtype cast in the wrapper).
    if (b_p, k_p) != (B, num_gene):
        x = jnp.pad(x, ((0, b_p - B), (0, k_p - num_gene)))

    grid = (b_p // tm, k_p // tk)
    n_btiles = b_p // tm

    x_bytes = jnp.dtype(x.dtype).itemsize
    cd_bytes = jnp.dtype(params.compute_dtype).itemsize
    out_bytes = jnp.dtype(out_dtype).itemsize

    # Honest VMEM accounting for this call (real dtypes, double-buffered
    # streams, resident W2/biases, f32 accumulator) + 25% / 2 MiB headroom,
    # capped at the generation-aware budget (never the full physical VMEM).
    vmem_est = (2 * tm * tk * x_bytes
                + 2 * tk * latent_p * cd_bytes
                + 2 * tm * latent_p * out_bytes
                + 2 * latent_p * latent_p * cd_bytes
                + 4 * latent_p * 4
                + tm * latent_p * 4)
    vmem_limit = int(min(params.vmem_budget,
                         max(vmem_est * 5 // 4 + (2 << 20), 8 << 20)))

    flops = 2 * b_p * k_p * latent_p + 2 * b_p * latent_p * latent_p
    # W1 is re-streamed once per batch tile (its index_map ignores i).
    bytes_accessed = int(b_p * k_p * x_bytes
                         + n_btiles * k_p * latent_p * cd_bytes
                         + latent_p * latent_p * cd_bytes
                         + 2 * latent_p * 4
                         + b_p * latent_p * out_bytes)
    cost = pl.CostEstimate(flops=int(flops), transcendentals=0,
                           bytes_accessed=bytes_accessed)

    def run(single_buffer_resident):
        if single_buffer_resident:
            def resident(shape):
                # Constant index_map -> double-buffering only wastes VMEM.
                return pl.BlockSpec(shape, lambda i, k: (0, 0),
                                    pipeline_mode=pl.Buffered(1))
        else:
            def resident(shape):
                return pl.BlockSpec(shape, lambda i, k: (0, 0))

        grid_spec = pltpu.PrefetchScalarGridSpec(
            num_scalar_prefetch=0,
            grid=grid,
            in_specs=[
                pl.BlockSpec((tm, tk), lambda i, k: (i, k)),        # x tile
                pl.BlockSpec((tk, latent_p), lambda i, k: (k, 0)),  # W1 tile
                resident((1, latent_p)),                            # b1
                resident((latent_p, latent_p)),                     # W2
                resident((1, latent_p)),                            # b2
            ],
            out_specs=pl.BlockSpec((tm, latent_p), lambda i, k: (i, 0)),
            scratch_shapes=[pltpu.VMEM((tm, latent_p), jnp.float32)],
        )
        out = pl.pallas_call(
            mlp_kernel,
            out_shape=jax.ShapeDtypeStruct((b_p, latent_p), out_dtype),
            grid_spec=grid_spec,
            compiler_params=pltpu.CompilerParams(
                dimension_semantics=("parallel", "arbitrary"),
                vmem_limit_bytes=vmem_limit),
            cost_estimate=cost,
        )(x, params.w1, params.b1, params.w2, params.b2)
        return jax.block_until_ready(out)

    try:
        out = run(True)
    except Exception:
        # pipeline_mode=pl.Buffered(1) unsupported on this jax/libtpu combo:
        # fall back to default double-buffered resident operands.
        out = run(False)

    return out[:B, :params.latent]


def mlp_reference(x, w1, b1, w2, b2, compute_dtype=jnp.bfloat16):
    """Pure-JAX reference of the same math (same bf16 operand casting)."""
    xc = x.astype(compute_dtype)
    h = jnp.dot(xc, w1.astype(compute_dtype),
                preferred_element_type=jnp.float32) + b1.astype(jnp.float32)
    h = jnp.maximum(h, 0.0)
    emb = jnp.dot(h.astype(compute_dtype), w2.astype(compute_dtype),
                  preferred_element_type=jnp.float32) + b2.astype(jnp.float32)
    return emb.astype(x.dtype)


def init_mlp_params(key, num_gene, latent_dim, dtype=jnp.float32):
    """Deterministic init mirroring nn.Linear (weights stored as (in, out) == W.T)."""
    k1, k2, k3, k4 = jax.random.split(key, 4)
    bound1 = 1.0 / (num_gene ** 0.5)
    bound2 = 1.0 / (latent_dim ** 0.5)
    w1 = jax.random.uniform(k1, (num_gene, latent_dim), dtype, -bound1, bound1)
    b1 = jax.random.uniform(k2, (latent_dim,), dtype, -bound1, bound1)
    w2 = jax.random.uniform(k3, (latent_dim, latent_dim), dtype, -bound2, bound2)
    b2 = jax.random.uniform(k4, (latent_dim,), dtype, -bound2, bound2)
    return w1, b1, w2, b2


if __name__ == "__main__":
    key = jax.random.PRNGKey(0)
    batch, num_gene, latent_dim = 8, 32, 16

    kx, kp = jax.random.split(key)
    x = jax.random.normal(kx, (batch, num_gene), dtype=jnp.float32)
    w1, b1, w2, b2 = init_mlp_params(kp, num_gene, latent_dim)

    # One-time weight prep (pad + cast), then the fused kernel forward.
    params = prepare_mlp_params(w1, b1, w2, b2)
    out = mlp_forward(x, params)
    out = jax.block_until_ready(out)

    ref = mlp_reference(x, w1, b1, w2, b2)
    assert out.shape == (batch, latent_dim)
    assert jnp.allclose(out, ref, atol=2e-2, rtol=2e-2), (
        float(jnp.max(jnp.abs(out - ref))))

    print("KERNEL_OK")
</pallas_src>

<mosaic_0001>
module attributes {stable_mosaic.version = 11 : i64} {
  func.func @mlp_kernel(%arg0: i32, %arg1: i32, %arg2: memref<8x128xf32, #tpu.memory_space<vmem>>, %arg3: memref<128x128xbf16, #tpu.memory_space<vmem>>, %arg4: memref<1x128xf32, #tpu.memory_space<vmem>>, %arg5: memref<128x128xbf16, #tpu.memory_space<vmem>>, %arg6: memref<1x128xf32, #tpu.memory_space<vmem>>, %arg7: memref<8x128xf32, #tpu.memory_space<vmem>>, %arg8: memref<8x128xf32, #tpu.memory_space<vmem>>) attributes {dimension_semantics = [#tpu.dimension_semantics<parallel>, #tpu.dimension_semantics<arbitrary>], iteration_bounds = array<i64: 1, 1>, scalar_prefetch = 0 : i64, scratch_operands = 1 : i64, tpu.core_type = #tpu.core_type<tc>, window_params = [{transform_indices = @transform_0, window_bounds = array<i64: 8, 128>}, {transform_indices = @transform_1, window_bounds = array<i64: 128, 128>}, {pipeline_mode = #tpu.pipeline_mode<synchronous>, transform_indices = @transform_2, window_bounds = array<i64: 1, 128>}, {pipeline_mode = #tpu.pipeline_mode<synchronous>, transform_indices = @transform_3, window_bounds = array<i64: 128, 128>}, {pipeline_mode = #tpu.pipeline_mode<synchronous>, transform_indices = @transform_4, window_bounds = array<i64: 1, 128>}, {transform_indices = @transform_5, window_bounds = array<i64: 8, 128>}]} {
    %c0_i32 = arith.constant 0 : i32
    %0 = arith.cmpi eq, %arg1, %c0_i32 : i32
    %1 = arith.extui %0 : i1 to i32
    %c0_i32_0 = arith.constant 0 : i32
    %2 = arith.cmpi ne, %1, %c0_i32_0 : i32
    scf.if %2 {
      %c0_10 = arith.constant 0 : index
      %c0_11 = arith.constant 0 : index
      %13 = vector.load %arg4[%c0_10, %c0_11] : memref<1x128xf32, #tpu.memory_space<vmem>>, vector<1x128xf32>
      %14 = vector.shape_cast %13 : vector<1x128xf32> to vector<1x128xf32>
      %15 = vector.broadcast %14 : vector<1x128xf32> to vector<8x128xf32>
      %c0_12 = arith.constant 0 : index
      %c0_13 = arith.constant 0 : index
      %16 = vector.load %arg8[%c0_12, %c0_13] : memref<8x128xf32, #tpu.memory_space<vmem>>, vector<8x128xf32>
      tpu.vector_store %arg8[%c0_12, %c0_13], %15 {strides = array<i32>} : memref<8x128xf32, #tpu.memory_space<vmem>>, vector<8x128xf32>,
    } else {
    }
    %c0 = arith.constant 0 : index
    %c0_1 = arith.constant 0 : index
    %3 = vector.load %arg8[%c0, %c0_1] : memref<8x128xf32, #tpu.memory_space<vmem>>, vector<8x128xf32>
    %c0_2 = arith.constant 0 : index
    %c0_3 = arith.constant 0 : index
    %4 = vector.load %arg2[%c0_2, %c0_3] : memref<8x128xf32, #tpu.memory_space<vmem>>, vector<8x128xf32>
    %5 = arith.truncf %4 : vector<8x128xf32> to vector<8x128xbf16>
    %c0_4 = arith.constant 0 : index
    %c0_5 = arith.constant 0 : index
    %6 = vector.load %arg3[%c0_4, %c0_5] : memref<128x128xbf16, #tpu.memory_space<vmem>>, vector<128x128xbf16>
    %cst = arith.constant dense<0.000000e+00> : vector<8x128xf32>
    %7 = tpu.matmul %5, %6, %cst {dimension_numbers = #tpu.dot_dimension_numbers<[1], [0], [0], [1], [0, 0, 1, 1], [], []>} : vector<8x128xbf16>, vector<128x128xbf16>, vector<8x128xf32> -> vector<8x128xf32>
    %8 = arith.addf %3, %7 : vector<8x128xf32>
    %c0_6 = arith.constant 0 : index
    %c0_7 = arith.constant 0 : index
    %9 = vector.load %arg8[%c0_6, %c0_7] : memref<8x128xf32, #tpu.memory_space<vmem>>, vector<8x128xf32>
    tpu.vector_store %arg8[%c0_6, %c0_7], %8 {strides = array<i32>} : memref<8x128xf32, #tpu.memory_space<vmem>>, vector<8x128xf32>,
    %c0_i32_8 = arith.constant 0 : i32
    %10 = arith.cmpi eq, %arg1, %c0_i32_8 : i32
    %11 = arith.extui %10 : i1 to i32
    %c0_i32_9 = arith.constant 0 : i32
    %12 = arith.cmpi ne, %11, %c0_i32_9 : i32
    scf.if %12 {
      %c0_10 = arith.constant 0 : index
      %c0_11 = arith.constant 0 : index
      %13 = vector.load %arg8[%c0_10, %c0_11] : memref<8x128xf32, #tpu.memory_space<vmem>>, vector<8x128xf32>
      %cst_12 = arith.constant 0.000000e+00 : f32
      %14 = vector.broadcast %cst_12 : f32 to vector<8x128xf32>
      %15 = arith.maximumf %13, %14 : vector<8x128xf32>
      %16 = arith.truncf %15 : vector<8x128xf32> to vector<8x128xbf16>
      %c0_13 = arith.constant 0 : index
      %c0_14 = arith.constant 0 : index
      %17 = vector.load %arg5[%c0_13, %c0_14] : memref<128x128xbf16, #tpu.memory_space<vmem>>, vector<128x128xbf16>
      %cst_15 = arith.constant dense<0.000000e+00> : vector<8x128xf32>
      %18 = tpu.matmul %16, %17, %cst_15 {dimension_numbers = #tpu.dot_dimension_numbers<[1], [0], [0], [1], [0, 0, 1, 1], [], []>} : vector<8x128xbf16>, vector<128x128xbf16>, vector<8x128xf32> -> vector<8x128xf32>
      %c0_16 = arith.constant 0 : index
      %c0_17 = arith.constant 0 : index
      %19 = vector.load %arg6[%c0_16, %c0_17] : memref<1x128xf32, #tpu.memory_space<vmem>>, vector<1x128xf32>
      %20 = vector.broadcast %19 : vector<1x128xf32> to vector<8x128xf32>
      %21 = arith.addf %18, %20 : vector<8x128xf32>
      %c0_18 = arith.constant 0 : index
      %c0_19 = arith.constant 0 : index
      %22 = vector.load %arg7[%c0_18, %c0_19] : memref<8x128xf32, #tpu.memory_space<vmem>>, vector<8x128xf32>
      tpu.vector_store %arg7[%c0_18, %c0_19], %21 {strides = array<i32>} : memref<8x128xf32, #tpu.memory_space<vmem>>, vector<8x128xf32>,
    } else {
    }
    return
  }
  func.func @transform_0(%arg0: i32, %arg1: i32) -> (i32, i32) {
    %c0_i32 = arith.constant 0 : i32
    return %arg0, %arg1 : i32, i32
  }
  func.func @transform_1(%arg0: i32, %arg1: i32) -> (i32, i32) {
    %c0_i32 = arith.constant 0 : i32
    %c0_i32_0 = arith.constant 0 : i32
    return %arg1, %c0_i32 : i32, i32
  }
  func.func @transform_2(%arg0: i32, %arg1: i32) -> (i32, i32) {
    %c0_i32 = arith.constant 0 : i32
    %c0_i32_0 = arith.constant 0 : i32
    %c0_i32_1 = arith.constant 0 : i32
    return %c0_i32, %c0_i32_0 : i32, i32
  }
  func.func @transform_3(%arg0: i32, %arg1: i32) -> (i32, i32) {
    %c0_i32 = arith.constant 0 : i32
    %c0_i32_0 = arith.constant 0 : i32
    %c0_i32_1 = arith.constant 0 : i32
    return %c0_i32, %c0_i32_0 : i32, i32
  }
  func.func @transform_4(%arg0: i32, %arg1: i32) -> (i32, i32) {
    %c0_i32 = arith.constant 0 : i32
    %c0_i32_0 = arith.constant 0 : i32
    %c0_i32_1 = arith.constant 0 : i32
    return %c0_i32, %c0_i32_0 : i32, i32
  }
  func.func @transform_5(%arg0: i32, %arg1: i32) -> (i32, i32) {
    %c0_i32 = arith.constant 0 : i32
    %c0_i32_0 = arith.constant 0 : i32
    return %arg0, %c0_i32 : i32, i32
  }
}

module attributes {stable_mosaic.version = 11 : i64} {
  func.func @mlp_kernel(%arg0: i32, %arg1: i32, %arg2: memref<8x128xf32, #tpu.memory_space<vmem>>, %arg3: memref<128x128xbf16, #tpu.memory_space<vmem>>, %arg4: memref<1x128xf32, #tpu.memory_space<vmem>>, %arg5: memref<128x128xbf16, #tpu.memory_space<vmem>>, %arg6: memref<1x128xf32, #tpu.memory_space<vmem>>, %arg7: memref<8x128xf32, #tpu.memory_space<vmem>>, %arg8: memref<8x128xf32, #tpu.memory_space<vmem>>) attributes {dimension_semantics = [#tpu.dimension_semantics<parallel>, #tpu.dimension_semantics<arbitrary>], iteration_bounds = array<i64: 1, 1>, scalar_prefetch = 0 : i64, scratch_operands = 1 : i64, tpu.core_type = #tpu.core_type<tc>, window_params = [{transform_indices = @transform_0, window_bounds = array<i64: 8, 128>}, {transform_indices = @transform_1, window_bounds = array<i64: 128, 128>}, {pipeline_mode = #tpu.pipeline_mode<synchronous>, transform_indices = @transform_2, window_bounds = array<i64: 1, 128>}, {pipeline_mode = #tpu.pipeline_mode<synchronous>, transform_indices = @transform_3, window_bounds = array<i64: 128, 128>}, {pipeline_mode = #tpu.pipeline_mode<synchronous>, transform_indices = @transform_4, window_bounds = array<i64: 1, 128>}, {transform_indices = @transform_5, window_bounds = array<i64: 8, 128>}]} {
    %c0_i32 = arith.constant 0 : i32
    %0 = arith.cmpi eq, %arg1, %c0_i32 : i32
    %1 = arith.extui %0 : i1 to i32
    %c0_i32_0 = arith.constant 0 : i32
    %2 = arith.cmpi ne, %1, %c0_i32_0 : i32
    scf.if %2 {
      %c0_10 = arith.constant 0 : index
      %c0_11 = arith.constant 0 : index
      %13 = vector.load %arg4[%c0_10, %c0_11] : memref<1x128xf32, #tpu.memory_space<vmem>>, vector<1x128xf32>
      %14 = vector.shape_cast %13 : vector<1x128xf32> to vector<1x128xf32>
      %15 = vector.broadcast %14 : vector<1x128xf32> to vector<8x128xf32>
      %c0_12 = arith.constant 0 : index
      %c0_13 = arith.constant 0 : index
      %16 = vector.load %arg8[%c0_12, %c0_13] : memref<8x128xf32, #tpu.memory_space<vmem>>, vector<8x128xf32>
      tpu.vector_store %arg8[%c0_12, %c0_13], %15 {strides = array<i32>} : memref<8x128xf32, #tpu.memory_space<vmem>>, vector<8x128xf32>,
    } else {
    }
    %c0 = arith.constant 0 : index
    %c0_1 = arith.constant 0 : index
    %3 = vector.load %arg8[%c0, %c0_1] : memref<8x128xf32, #tpu.memory_space<vmem>>, vector<8x128xf32>
    %c0_2 = arith.constant 0 : index
    %c0_3 = arith.constant 0 : index
    %4 = vector.load %arg2[%c0_2, %c0_3] : memref<8x128xf32, #tpu.memory_space<vmem>>, vector<8x128xf32>
    %5 = arith.truncf %4 : vector<8x128xf32> to vector<8x128xbf16>
    %c0_4 = arith.constant 0 : index
    %c0_5 = arith.constant 0 : index
    %6 = vector.load %arg3[%c0_4, %c0_5] : memref<128x128xbf16, #tpu.memory_space<vmem>>, vector<128x128xbf16>
    %cst = arith.constant dense<0.000000e+00> : vector<8x128xf32>
    %7 = tpu.matmul %5, %6, %cst {dimension_numbers = #tpu.dot_dimension_numbers<[1], [0], [0], [1], [0, 0, 1, 1], [], []>} : vector<8x128xbf16>, vector<128x128xbf16>, vector<8x128xf32> -> vector<8x128xf32>
    %8 = arith.addf %3, %7 : vector<8x128xf32>
    %c0_6 = arith.constant 0 : index
    %c0_7 = arith.constant 0 : index
    %9 = vector.load %arg8[%c0_6, %c0_7] : memref<8x128xf32, #tpu.memory_space<vmem>>, vector<8x128xf32>
    tpu.vector_store %arg8[%c0_6, %c0_7], %8 {strides = array<i32>} : memref<8x128xf32, #tpu.memory_space<vmem>>, vector<8x128xf32>,
    %c0_i32_8 = arith.constant 0 : i32
    %10 = arith.cmpi eq, %arg1, %c0_i32_8 : i32
    %11 = arith.extui %10 : i1 to i32
    %c0_i32_9 = arith.constant 0 : i32
    %12 = arith.cmpi ne, %11, %c0_i32_9 : i32
    scf.if %12 {
      %c0_10 = arith.constant 0 : index
      %c0_11 = arith.constant 0 : index
      %13 = vector.load %arg8[%c0_10, %c0_11] : memref<8x128xf32, #tpu.memory_space<vmem>>, vector<8x128xf32>
      %cst_12 = arith.constant 0.000000e+00 : f32
      %14 = vector.broadcast %cst_12 : f32 to vector<8x128xf32>
      %15 = arith.maximumf %13, %14 : vector<8x128xf32>
      %16 = arith.truncf %15 : vector<8x128xf32> to vector<8x128xbf16>
      %c0_13 = arith.constant 0 : index
      %c0_14 = arith.constant 0 : index
      %17 = vector.load %arg5[%c0_13, %c0_14] : memref<128x128xbf16, #tpu.memory_space<vmem>>, vector<128x128xbf16>
      %cst_15 = arith.constant dense<0.000000e+00> : vector<8x128xf32>
      %18 = tpu.matmul %16, %17, %cst_15 {dimension_numbers = #tpu.dot_dimension_numbers<[1], [0], [0], [1], [0, 0, 1, 1], [], []>} : vector<8x128xbf16>, vector<128x128xbf16>, vector<8x128xf32> -> vector<8x128xf32>
      %c0_16 = arith.constant 0 : index
      %c0_17 = arith.constant 0 : index
      %19 = vector.load %arg6[%c0_16, %c0_17] : memref<1x128xf32, #tpu.memory_space<vmem>>, vector<1x128xf32>
      %20 = vector.broadcast %19 : vector<1x128xf32> to vector<8x128xf32>
      %21 = arith.addf %18, %20 : vector<8x128xf32>
      %c0_18 = arith.constant 0 : index
      %c0_19 = arith.constant 0 : index
      %22 = vector.load %arg7[%c0_18, %c0_19] : memref<8x128xf32, #tpu.memory_space<vmem>>, vector<8x128xf32>
      tpu.vector_store %arg7[%c0_18, %c0_19], %21 {strides = array<i32>} : memref<8x128xf32, #tpu.memory_space<vmem>>, vector<8x128xf32>,
    } else {
    }
    return
  }
  func.func @transform_0(%arg0: i32, %arg1: i32) -> (i32, i32) {
    %c0_i32 = arith.constant 0 : i32
    return %arg0, %arg1 : i32, i32
  }
  func.func @transform_1(%arg0: i32, %arg1: i32) -> (i32, i32) {
    %c0_i32 = arith.constant 0 : i32
    %c0_i32_0 = arith.constant 0 : i32
    return %arg1, %c0_i32 : i32, i32
  }
  func.func @transform_2(%arg0: i32, %arg1: i32) -> (i32, i32) {
    %c0_i32 = arith.constant 0 : i32
    %c0_i32_0 = arith.constant 0 : i32
    %c0_i32_1 = arith.constant 0 : i32
    return %c0_i32, %c0_i32_0 : i32, i32
  }
  func.func @transform_3(%arg0: i32, %arg1: i32) -> (i32, i32) {
    %c0_i32 = arith.constant 0 : i32
    %c0_i32_0 = arith.constant 0 : i32
    %c0_i32_1 = arith.constant 0 : i32
    return %c0_i32, %c0_i32_0 : i32, i32
  }
  func.func @transform_4(%arg0: i32, %arg1: i32) -> (i32, i32) {
    %c0_i32 = arith.constant 0 : i32
    %c0_i32_0 = arith.constant 0 : i32
    %c0_i32_1 = arith.constant 0 : i32
    return %c0_i32, %c0_i32_0 : i32, i32
  }
  func.func @transform_5(%arg0: i32, %arg1: i32) -> (i32, i32) {
    %c0_i32 = arith.constant 0 : i32
    %c0_i32_0 = arith.constant 0 : i32
    return %arg0, %c0_i32 : i32, i32
  }
}

</mosaic_0001>

<bundles_post_ra>
// kernel: tpu_custom_call.1
= control target key start
LH: loop header
LB: loop body
LE: loop exit
PB: predicated region body
PF: predicated region fallthrough
CT: control target
= control target key end

     0   :  { %10 = vsyncpa [#allocation4], 0  ;;  %s608_s0 = inlined_call_operand.hbm [shape: f32[8,128], index: 0, kind: input, shape index: {}]   ;;  %s609_s1 = inlined_call_operand.hbm [shape: bf16[128,128], index: 1, kind: input, shape index: {}]   ;;  %s610_s2 = inlined_call_operand.vmem [shape: f32[1,128], index: 2, kind: input, shape index: {}]   ;;  %s611_s3 = inlined_call_operand.hbm [shape: bf16[128,128], index: 3, kind: input, shape index: {}]   ;;  %s612_s4 = inlined_call_operand.vmem [shape: f32[1,128], index: 4, kind: input, shape index: {}]   ;;  %s613_s5 = inlined_call_operand.hbm [shape: f32[8,128], index: 5, kind: output, shape index: {}]  }
   0x1   :  { %11 = vsyncpa [#allocation7], 0 }
   0x2   :  { %12 = vsyncpa [#allocation5], 0  ;;  %s510_s18 = smov [#allocation6]   ;;  %s416_s22 = scalar_lea.hbm %s609_s1, 1024 }
   0x3   :  { %s28_s19 = sshll.u32 %s510_s18, 4  ;;  %p417_p0 = scmp.ne.s32.totalorder %s609_s1, %s416_s22  ;;  %s29_s19 = int_to_ptr.vmem [resolvable:$true] %s28_s19 }
   0x4   :  { %p420_p1 = scmp.lt.u32.totalorder %s416_s22, %s609_s1 }
   0x6   :  { %p422_p2 = pnand %p420_p1, %p417_p0 }
   0x8   :  { %425 = shalt.err (!%p422_p2)
}
   0x9   :  { %s426_s27 = scalar_lea.vmem %s29_s19, 1024  ;;  %p431_p4 = scmp.lt.s32.totalorder %s29_s19, %s29_s19 }
   0xa   :  { %p427_p3 = scmp.ne.s32.totalorder %s29_s19, %s426_s27  ;;  %p432_p5 = scmp.lt.s32.totalorder %s426_s27, %s426_s27 }
   0xc   :  { %p433_p6 = por %p432_p5, %p431_p4 }
   0xe   :  { %p434_p7 = pnand %p433_p6, %p427_p3 }
  0x10   :  { %437 = shalt.err (!%p434_p7)
}
  0x11   :  { %s511_s28 = smov 64   ;;  %s512_s29 = smov 4  }
  0x12   :  { %34 = dma.hbm_to_vmem [thread:$0]  %s609_s1, 1024, %s29_s19, [#allocation7], %s511_s28, %s511_s28, %s512_s29  }
  0x13   :  { %s513_s7 = smov [#allocation3]   ;;  %s514_s9 = smov [#allocation8]  }
  0x14   :  { %s19_s8 = sshll.u32 %s513_s7, 4  ;;  %s42_s10 = sshll.u32 %s514_s9, 4  ;;  %s20_s8 = int_to_ptr.vmem [resolvable:$true] %s19_s8  ;;  %s43_s10 = int_to_ptr.vmem [resolvable:$true] %s42_s10 }
  0x15   :  { %s438_s13 = scalar_lea.hbm %s608_s0, 128 }
  0x16   :  { %p439_p8 = scmp.ne.s32.totalorder %s608_s0, %s438_s13  ;;  %p442_p9 = scmp.lt.u32.totalorder %s438_s13, %s608_s0 }
  0x18   :  { %p444_p10 = pnand %p442_p9, %p439_p8 }
  0x1a   :  { %447 = shalt.err (!%p444_p10)
}
  0x1b   :  { %s448_s1 = scalar_lea.vmem %s20_s8, 128  ;;  %p453_p12 = scmp.lt.s32.totalorder %s20_s8, %s20_s8 }
  0x1c   :  { %p449_p11 = scmp.ne.s32.totalorder %s20_s8, %s448_s1  ;;  %p454_p13 = scmp.lt.s32.totalorder %s448_s1, %s448_s1 }
  0x1e   :  { %p455_p0 = por %p454_p13, %p453_p12 }
  0x20   :  { %p456_p1 = pnand %p455_p0, %p449_p11 }
  0x22   :  { %459 = shalt.err (!%p456_p1)
}
  0x23   :  { %22 = dma.hbm_to_vmem [thread:$0]  %s608_s0, 128, %s20_s8, [#allocation4]  }
  0x24   :  { %s460_s22 = scalar_lea.hbm %s611_s3, 1024 }
  0x25   :  { %p461_p2 = scmp.ne.s32.totalorder %s611_s3, %s460_s22  ;;  %p464_p3 = scmp.lt.u32.totalorder %s460_s22, %s611_s3 }
  0x27   :  { %p466_p4 = pnand %p464_p3, %p461_p2 }
  0x29   :  { %469 = shalt.err (!%p466_p4)
}
  0x2a   :  { %s470_s27 = scalar_lea.vmem %s43_s10, 1024  ;;  %p475_p6 = scmp.lt.s32.totalorder %s43_s10, %s43_s10 }
  0x2b   :  { %p471_p5 = scmp.ne.s32.totalorder %s43_s10, %s470_s27  ;;  %p476_p7 = scmp.lt.s32.totalorder %s470_s27, %s470_s27 }
  0x2d   :  { %p477_p8 = por %p476_p7, %p475_p6 }
  0x2f   :  { %p478_p9 = pnand %p477_p8, %p471_p5 }
  0x31   :  { %481 = shalt.err (!%p478_p9)
}
  0x32   :  { %48 = dma.hbm_to_vmem [thread:$0]  %s611_s3, 1024, %s43_s10, [#allocation7], %s511_s28, %s511_s28, %s512_s29  }
  0x33   :  { %504 = dma.done.wait [#allocation4], 128  }
  0x34   :  { %505 = vsyncadd [#allocation4], 4294967168 }
  0x35   :  { %506 = dma.done.wait [#allocation7], 2048  }
  0x36   :  { %507 = vsyncadd [#allocation7], 4294965248  ;;  %v515_v0 = vmov 0.0   ;;  %vm516_vm0 = vmmov 0   ;;  %v400_v1 = vld [vmem:[#allocation6] sm:$0xff]   ;;  %v401_v2 = vld [vmem:[#allocation6 + $0x8] sm:$0xff]  }
  0x37   :  { %352 = vmatprep.subr.bf16.mxu0 %v515_v0  ;;  %368 = vmatprep.mubr.msk.bf16.mxu0 %vm516_vm0, %v515_v0  ;;  %v402_v3 = vld [vmem:[#allocation6 + $0x10] sm:$0xff]   ;;  %v408_v4 = vld [vmem:[#allocation8] sm:$0xff]   ;;  %v403_v5 = vld [vmem:[#allocation6 + $0x18] sm:$0xff]   ;;  %s517_s7 = smov [#allocation9]  }
  0x38   :  { %372 = vmatprep.subr.bf16.mxu1 %v515_v0  ;;  %388 = vmatprep.mubr.msk.bf16.mxu1 %vm516_vm0, %v515_v0  ;;  %v409_v6 = vld [vmem:[#allocation8 + $0x8] sm:$0xff]   ;;  %v404_v7 = vld [vmem:[#allocation6 + $0x20] sm:$0xff]   ;;  %v410_v8 = vld [vmem:[#allocation8 + $0x10] sm:$0xff]   ;;  %s306_s8 = sshll.u32 %s517_s7, 4  ;;  %s307_s8 = int_to_ptr.vmem [resolvable:$true] %s306_s8 }
  0x39   :  { %353 = vmatpush3.bf16.msra.mxu0 %v400_v1  ;;  %373 = vmatpush3.bf16.msra.mxu1 %v408_v4  ;;  %v405_v9 = vld [vmem:[#allocation6 + $0x28] sm:$0xff]   ;;  %v411_v10 = vld [vmem:[#allocation8 + $0x18] sm:$0xff]   ;;  %v406_v11 = vld [vmem:[#allocation6 + $0x30] sm:$0xff]   ;;  %p487_p11 = scmp.lt.s32.totalorder %s307_s8, %s307_s8 }
  0x3a   :  { %354 = vmatprep.subr.bf16.mxu0 %v515_v0  ;;  %374 = vmatprep.subr.bf16.mxu1 %v515_v0  ;;  %v412_v12 = vld [vmem:[#allocation8 + $0x20] sm:$0xff]   ;;  %v407_v13 = vld [vmem:[#allocation6 + $0x38] sm:$0xff]   ;;  %v413_v15 = vld [vmem:[#allocation8 + $0x28] sm:$0xff]  }
  0x3b   :  { %v74_v14 = vld [vmem:[#allocation3] sm:$0xff]  ;;  %v414_v17 = vld [vmem:[#allocation8 + $0x30] sm:$0xff]  }
  0x3c   :  { %v75_v16 = vpack.c.bf16 %v74_v14, %v74_v14  ;;  %v415_v18 = vld [vmem:[#allocation8 + $0x38] sm:$0xff]  }
  0x3d   :  { %355 = vmatpush3.bf16.msra.mxu0 %v401_v2  ;;  %375 = vmatpush3.bf16.msra.mxu1 %v409_v6  ;;  %v316_v19 = vld [vmem:[%s610_s2] ss:$0 sm:$0xff]  ;;  %s482_s2 = scalar_lea.vmem %s307_s8, 128 }
  0x3e   :  { %356 = vmatprep.subr.bf16.mxu0 %v515_v0  ;;  %376 = vmatprep.subr.bf16.mxu1 %v515_v0  ;;  %v325_v27 = vld [vmem:[%s612_s4] ss:$0 sm:$0xff]  ;;  %p483_p10 = scmp.ne.s32.totalorder %s307_s8, %s482_s2  ;;  %p488_p12 = scmp.lt.s32.totalorder %s482_s2, %s482_s2 }
  0x40   :  { %p489_p13 = por %p488_p12, %p487_p11 }
  0x41   :  { %357 = vmatpush3.bf16.msra.mxu0 %v402_v3  ;;  %377 = vmatpush3.bf16.msra.mxu1 %v410_v8 }
  0x42   :  { %358 = vmatprep.subr.bf16.mxu0 %v515_v0  ;;  %378 = vmatprep.subr.bf16.mxu1 %v515_v0  ;;  %p490_p0 = pnand %p489_p13, %p483_p10 }
  0x45   :  { %359 = vmatpush3.bf16.msra.mxu0 %v403_v5  ;;  %379 = vmatpush3.bf16.msra.mxu1 %v411_v10 }
  0x46   :  { %360 = vmatprep.subr.bf16.mxu0 %v515_v0  ;;  %380 = vmatprep.subr.bf16.mxu1 %v515_v0 }
  0x49   :  { %361 = vmatpush3.bf16.msra.mxu0 %v404_v7  ;;  %381 = vmatpush3.bf16.msra.mxu1 %v412_v12 }
  0x4a   :  { %362 = vmatprep.subr.bf16.mxu0 %v515_v0  ;;  %382 = vmatprep.subr.bf16.mxu1 %v515_v0 }
  0x4d   :  { %363 = vmatpush3.bf16.msra.mxu0 %v405_v9  ;;  %383 = vmatpush3.bf16.msra.mxu1 %v413_v15 }
  0x4e   :  { %364 = vmatprep.subr.bf16.mxu0 %v515_v0  ;;  %384 = vmatprep.subr.bf16.mxu1 %v515_v0 }
  0x51   :  { %365 = vmatpush3.bf16.msra.mxu0 %v406_v11  ;;  %385 = vmatpush3.bf16.msra.mxu1 %v414_v17 }
  0x52   :  { %366 = vmatprep.subr.bf16.mxu0 %v515_v0  ;;  %386 = vmatprep.subr.bf16.mxu1 %v515_v0 }
  0x55   :  { %367 = vmatpush3.bf16.msra.mxu0 %v407_v13  ;;  %387 = vmatpush3.bf16.msra.mxu1 %v415_v18 }
  0x58   :  { %369 = vmatmul.mubr.bf16.vlgmr.msra.gmra.mrb[0].mxu0 %v75_v16 }
 0x12b   :  { %v174_v20 = vpop.f32.mrb[0].mxu0 }
 0x12c   :  { %v180_v21 = vadd.f32 %v316_v19, %v174_v20  ;;  %v370_v22 = vpop.f32.mrb[1].mxu0 }
 0x12d   :  { %v177_v23 = vpop.f32.mrb[2].mxu0 }
 0x12e   :  { %v186_v24 = vmax.f32 %v180_v21, 0.0  ;;  %v371_v25 = vpop.f32.mrb[3].mxu0 }
 0x130   :  { %v187_v26 = vpack.c.bf16 %v186_v24, %v186_v24 }
 0x132   :  { %389 = vmatmul.mubr.bf16.vlgmr.msra.gmra.mrb[0].mxu1 %v187_v26 }
 0x205   :  { %v293_v28 = vpop.f32.mrb[0].mxu1 }
 0x206   :  { %v294_v29 = vadd.f32 %v325_v27, %v293_v28  ;;  %v390_v30 = vpop.f32.mrb[1].mxu1 }
 0x207   :  { %v296_v31 = vpop.f32.mrb[2].mxu1 }
 0x208   :  { %299 = vst [vmem:[#allocation9] sm:$0xff] %v294_v29  ;;  %v391_v32 = vpop.f32.mrb[3].mxu1 }
 0x209   :  { %493 = shalt.err (!%p490_p0)
}
 0x20a   :  { %s494_s4 = scalar_lea.hbm %s613_s5, 128 }
 0x20b   :  { %p495_p1 = scmp.ne.s32.totalorder %s613_s5, %s494_s4  ;;  %p498_p2 = scmp.lt.u32.totalorder %s494_s4, %s613_s5 }
 0x20d   :  { %p500_p3 = pnand %p498_p2, %p495_p1 }
 0x20f   :  { %503 = shalt.err (!%p500_p3)
}
 0x210   :  { %309 = dma.vmem_to_hbm [thread:$0]  %s307_s8, 128, %s613_s5, [#allocation5]  }
 0x211   :  { %508 = dma.done.wait [#allocation5], 128  }
 0x212   :  { %509 = vsyncadd [#allocation5], 4294967168 }
 0x213   :  { %313 = vsyncpa [#allocation4], 1 }
 0x214   :  { %314 = vsyncpa [#allocation7], 1 }
 0x215   :  { %315 = vsyncpa [#allocation5], 1 }

// kernel: tpu_custom_call.1
= control target key start
LH: loop header
LB: loop body
LE: loop exit
PB: predicated region body
PF: predicated region fallthrough
CT: control target
= control target key end

     0   :  { %10 = vsyncpa [#allocation4], 0  ;;  %s608_s0 = inlined_call_operand.hbm [shape: f32[8,128], index: 0, kind: input, shape index: {}]   ;;  %s609_s1 = inlined_call_operand.hbm [shape: bf16[128,128], index: 1, kind: input, shape index: {}]   ;;  %s610_s2 = inlined_call_operand.vmem [shape: f32[1,128], index: 2, kind: input, shape index: {}]   ;;  %s611_s3 = inlined_call_operand.hbm [shape: bf16[128,128], index: 3, kind: input, shape index: {}]   ;;  %s612_s4 = inlined_call_operand.vmem [shape: f32[1,128], index: 4, kind: input, shape index: {}]   ;;  %s613_s5 = inlined_call_operand.hbm [shape: f32[8,128], index: 5, kind: output, shape index: {}]  }
   0x1   :  { %11 = vsyncpa [#allocation7], 0 }
   0x2   :  { %12 = vsyncpa [#allocation5], 0  ;;  %s510_s18 = smov [#allocation6]   ;;  %s416_s22 = scalar_lea.hbm %s609_s1, 1024 }
   0x3   :  { %s28_s19 = sshll.u32 %s510_s18, 4  ;;  %p417_p0 = scmp.ne.s32.totalorder %s609_s1, %s416_s22  ;;  %s29_s19 = int_to_ptr.vmem [resolvable:$true] %s28_s19 }
   0x4   :  { %p420_p1 = scmp.lt.u32.totalorder %s416_s22, %s609_s1 }
   0x6   :  { %p422_p2 = pnand %p420_p1, %p417_p0 }
   0x8   :  { %425 = shalt.err (!%p422_p2)
}
   0x9   :  { %s426_s27 = scalar_lea.vmem %s29_s19, 1024  ;;  %p431_p4 = scmp.lt.s32.totalorder %s29_s19, %s29_s19 }
   0xa   :  { %p427_p3 = scmp.ne.s32.totalorder %s29_s19, %s426_s27  ;;  %p432_p5 = scmp.lt.s32.totalorder %s426_s27, %s426_s27 }
   0xc   :  { %p433_p6 = por %p432_p5, %p431_p4 }
   0xe   :  { %p434_p7 = pnand %p433_p6, %p427_p3 }
  0x10   :  { %437 = shalt.err (!%p434_p7)
}
  0x11   :  { %s511_s28 = smov 64   ;;  %s512_s29 = smov 4  }
  0x12   :  { %34 = dma.hbm_to_vmem [thread:$0]  %s609_s1, 1024, %s29_s19, [#allocation7], %s511_s28, %s511_s28, %s512_s29  }
  0x13   :  { %s513_s7 = smov [#allocation3]   ;;  %s514_s9 = smov [#allocation8]  }
  0x14   :  { %s19_s8 = sshll.u32 %s513_s7, 4  ;;  %s42_s10 = sshll.u32 %s514_s9, 4  ;;  %s20_s8 = int_to_ptr.vmem [resolvable:$true] %s19_s8  ;;  %s43_s10 = int_to_ptr.vmem [resolvable:$true] %s42_s10 }
  0x15   :  { %s438_s13 = scalar_lea.hbm %s608_s0, 128 }
  0x16   :  { %p439_p8 = scmp.ne.s32.totalorder %s608_s0, %s438_s13  ;;  %p442_p9 = scmp.lt.u32.totalorder %s438_s13, %s608_s0 }
  0x18   :  { %p444_p10 = pnand %p442_p9, %p439_p8 }
  0x1a   :  { %447 = shalt.err (!%p444_p10)
}
  0x1b   :  { %s448_s1 = scalar_lea.vmem %s20_s8, 128  ;;  %p453_p12 = scmp.lt.s32.totalorder %s20_s8, %s20_s8 }
  0x1c   :  { %p449_p11 = scmp.ne.s32.totalorder %s20_s8, %s448_s1  ;;  %p454_p13 = scmp.lt.s32.totalorder %s448_s1, %s448_s1 }
  0x1e   :  { %p455_p0 = por %p454_p13, %p453_p12 }
  0x20   :  { %p456_p1 = pnand %p455_p0, %p449_p11 }
  0x22   :  { %459 = shalt.err (!%p456_p1)
}
  0x23   :  { %22 = dma.hbm_to_vmem [thread:$0]  %s608_s0, 128, %s20_s8, [#allocation4]  }
  0x24   :  { %s460_s22 = scalar_lea.hbm %s611_s3, 1024 }
  0x25   :  { %p461_p2 = scmp.ne.s32.totalorder %s611_s3, %s460_s22  ;;  %p464_p3 = scmp.lt.u32.totalorder %s460_s22, %s611_s3 }
  0x27   :  { %p466_p4 = pnand %p464_p3, %p461_p2 }
  0x29   :  { %469 = shalt.err (!%p466_p4)
}
  0x2a   :  { %s470_s27 = scalar_lea.vmem %s43_s10, 1024  ;;  %p475_p6 = scmp.lt.s32.totalorder %s43_s10, %s43_s10 }
  0x2b   :  { %p471_p5 = scmp.ne.s32.totalorder %s43_s10, %s470_s27  ;;  %p476_p7 = scmp.lt.s32.totalorder %s470_s27, %s470_s27 }
  0x2d   :  { %p477_p8 = por %p476_p7, %p475_p6 }
  0x2f   :  { %p478_p9 = pnand %p477_p8, %p471_p5 }
  0x31   :  { %481 = shalt.err (!%p478_p9)
}
  0x32   :  { %48 = dma.hbm_to_vmem [thread:$0]  %s611_s3, 1024, %s43_s10, [#allocation7], %s511_s28, %s511_s28, %s512_s29  }
  0x33   :  { %504 = dma.done.wait [#allocation4], 128  }
  0x34   :  { %505 = vsyncadd [#allocation4], 4294967168 }
  0x35   :  { %506 = dma.done.wait [#allocation7], 2048  }
  0x36   :  { %507 = vsyncadd [#allocation7], 4294965248  ;;  %v515_v0 = vmov 0.0   ;;  %vm516_vm0 = vmmov 0   ;;  %v400_v1 = vld [vmem:[#allocation6] sm:$0xff]   ;;  %v401_v2 = vld [vmem:[#allocation6 + $0x8] sm:$0xff]  }
  0x37   :  { %352 = vmatprep.subr.bf16.mxu0 %v515_v0  ;;  %368 = vmatprep.mubr.msk.bf16.mxu0 %vm516_vm0, %v515_v0  ;;  %v402_v3 = vld [vmem:[#allocation6 + $0x10] sm:$0xff]   ;;  %v408_v4 = vld [vmem:[#allocation8] sm:$0xff]   ;;  %v403_v5 = vld [vmem:[#allocation6 + $0x18] sm:$0xff]   ;;  %s517_s7 = smov [#allocation9]  }
  0x38   :  { %372 = vmatprep.subr.bf16.mxu1 %v515_v0  ;;  %388 = vmatprep.mubr.msk.bf16.mxu1 %vm516_vm0, %v515_v0  ;;  %v409_v6 = vld [vmem:[#allocation8 + $0x8] sm:$0xff]   ;;  %v404_v7 = vld [vmem:[#allocation6 + $0x20] sm:$0xff]   ;;  %v410_v8 = vld [vmem:[#allocation8 + $0x10] sm:$0xff]   ;;  %s306_s8 = sshll.u32 %s517_s7, 4  ;;  %s307_s8 = int_to_ptr.vmem [resolvable:$true] %s306_s8 }
  0x39   :  { %353 = vmatpush3.bf16.msra.mxu0 %v400_v1  ;;  %373 = vmatpush3.bf16.msra.mxu1 %v408_v4  ;;  %v405_v9 = vld [vmem:[#allocation6 + $0x28] sm:$0xff]   ;;  %v411_v10 = vld [vmem:[#allocation8 + $0x18] sm:$0xff]   ;;  %v406_v11 = vld [vmem:[#allocation6 + $0x30] sm:$0xff]   ;;  %p487_p11 = scmp.lt.s32.totalorder %s307_s8, %s307_s8 }
  0x3a   :  { %354 = vmatprep.subr.bf16.mxu0 %v515_v0  ;;  %374 = vmatprep.subr.bf16.mxu1 %v515_v0  ;;  %v412_v12 = vld [vmem:[#allocation8 + $0x20] sm:$0xff]   ;;  %v407_v13 = vld [vmem:[#allocation6 + $0x38] sm:$0xff]   ;;  %v413_v15 = vld [vmem:[#allocation8 + $0x28] sm:$0xff]  }
  0x3b   :  { %v74_v14 = vld [vmem:[#allocation3] sm:$0xff]  ;;  %v414_v17 = vld [vmem:[#allocation8 + $0x30] sm:$0xff]  }
  0x3c   :  { %v75_v16 = vpack.c.bf16 %v74_v14, %v74_v14  ;;  %v415_v18 = vld [vmem:[#allocation8 + $0x38] sm:$0xff]  }
  0x3d   :  { %355 = vmatpush3.bf16.msra.mxu0 %v401_v2  ;;  %375 = vmatpush3.bf16.msra.mxu1 %v409_v6  ;;  %v316_v19 = vld [vmem:[%s610_s2] ss:$0 sm:$0xff]  ;;  %s482_s2 = scalar_lea.vmem %s307_s8, 128 }
  0x3e   :  { %356 = vmatprep.subr.bf16.mxu0 %v515_v0  ;;  %376 = vmatprep.subr.bf16.mxu1 %v515_v0  ;;  %v325_v27 = vld [vmem:[%s612_s4] ss:$0 sm:$0xff]  ;;  %p483_p10 = scmp.ne.s32.totalorder %s307_s8, %s482_s2  ;;  %p488_p12 = scmp.lt.s32.totalorder %s482_s2, %s482_s2 }
  0x40   :  { %p489_p13 = por %p488_p12, %p487_p11 }
  0x41   :  { %357 = vmatpush3.bf16.msra.mxu0 %v402_v3  ;;  %377 = vmatpush3.bf16.msra.mxu1 %v410_v8 }
  0x42   :  { %358 = vmatprep.subr.bf16.mxu0 %v515_v0  ;;  %378 = vmatprep.subr.bf16.mxu1 %v515_v0  ;;  %p490_p0 = pnand %p489_p13, %p483_p10 }
  0x45   :  { %359 = vmatpush3.bf16.msra.mxu0 %v403_v5  ;;  %379 = vmatpush3.bf16.msra.mxu1 %v411_v10 }
  0x46   :  { %360 = vmatprep.subr.bf16.mxu0 %v515_v0  ;;  %380 = vmatprep.subr.bf16.mxu1 %v515_v0 }
  0x49   :  { %361 = vmatpush3.bf16.msra.mxu0 %v404_v7  ;;  %381 = vmatpush3.bf16.msra.mxu1 %v412_v12 }
  0x4a   :  { %362 = vmatprep.subr.bf16.mxu0 %v515_v0  ;;  %382 = vmatprep.subr.bf16.mxu1 %v515_v0 }
  0x4d   :  { %363 = vmatpush3.bf16.msra.mxu0 %v405_v9  ;;  %383 = vmatpush3.bf16.msra.mxu1 %v413_v15 }
  0x4e   :  { %364 = vmatprep.subr.bf16.mxu0 %v515_v0  ;;  %384 = vmatprep.subr.bf16.mxu1 %v515_v0 }
  0x51   :  { %365 = vmatpush3.bf16.msra.mxu0 %v406_v11  ;;  %385 = vmatpush3.bf16.msra.mxu1 %v414_v17 }
  0x52   :  { %366 = vmatprep.subr.bf16.mxu0 %v515_v0  ;;  %386 = vmatprep.subr.bf16.mxu1 %v515_v0 }
  0x55   :  { %367 = vmatpush3.bf16.msra.mxu0 %v407_v13  ;;  %387 = vmatpush3.bf16.msra.mxu1 %v415_v18 }
  0x58   :  { %369 = vmatmul.mubr.bf16.vlgmr.msra.gmra.mrb[0].mxu0 %v75_v16 }
 0x12b   :  { %v174_v20 = vpop.f32.mrb[0].mxu0 }
 0x12c   :  { %v180_v21 = vadd.f32 %v316_v19, %v174_v20  ;;  %v370_v22 = vpop.f32.mrb[1].mxu0 }
 0x12d   :  { %v177_v23 = vpop.f32.mrb[2].mxu0 }
 0x12e   :  { %v186_v24 = vmax.f32 %v180_v21, 0.0  ;;  %v371_v25 = vpop.f32.mrb[3].mxu0 }
 0x130   :  { %v187_v26 = vpack.c.bf16 %v186_v24, %v186_v24 }
 0x132   :  { %389 = vmatmul.mubr.bf16.vlgmr.msra.gmra.mrb[0].mxu1 %v187_v26 }
 0x205   :  { %v293_v28 = vpop.f32.mrb[0].mxu1 }
 0x206   :  { %v294_v29 = vadd.f32 %v325_v27, %v293_v28  ;;  %v390_v30 = vpop.f32.mrb[1].mxu1 }
 0x207   :  { %v296_v31 = vpop.f32.mrb[2].mxu1 }
 0x208   :  { %299 = vst [vmem:[#allocation9] sm:$0xff] %v294_v29  ;;  %v391_v32 = vpop.f32.mrb[3].mxu1 }
 0x209   :  { %493 = shalt.err (!%p490_p0)
}
 0x20a   :  { %s494_s4 = scalar_lea.hbm %s613_s5, 128 }
 0x20b   :  { %p495_p1 = scmp.ne.s32.totalorder %s613_s5, %s494_s4  ;;  %p498_p2 = scmp.lt.u32.totalorder %s494_s4, %s613_s5 }
 0x20d   :  { %p500_p3 = pnand %p498_p2, %p495_p1 }
 0x20f   :  { %503 = shalt.err (!%p500_p3)
}
 0x210   :  { %309 = dma.vmem_to_hbm [thread:$0]  %s307_s8, 128, %s613_s5, [#allocation5]  }
 0x211   :  { %508 = dma.done.wait [#allocation5], 128  }
 0x212   :  { %509 = vsyncadd [#allocation5], 4294967168 }
 0x213   :  { %313 = vsyncpa [#allocation4], 1 }
 0x214   :  { %314 = vsyncpa [#allocation7], 1 }
 0x215   :  { %315 = vsyncpa [#allocation5], 1 }

</bundles_post_ra>
